<compile_context>
chip_gen: v6e
topology: v6e:2x2x1
jax: 0.10.0
libtpu: 0.0.40
codegen_flags: <defaults>
</compile_context>

<pallas_src>
import jax
import jax.numpy as jnp
from jax.experimental import pallas as pl
from jax.experimental.pallas import tpu as pltpu


def _round_up(n: int, m: int) -> int:
    return ((n + m - 1) // m) * m


def _mlp_kernel(xt_ref, w1_ref, b1_ref, w2c_ref, b2_ref, ot_ref):
    # fc1: (20, 10) @ (10, TB) -> (20, TB); batch on the lane axis (lane-dense).
    h = jnp.dot(w1_ref[...], xt_ref[...], preferred_element_type=jnp.float32)
    h = jnp.maximum(h + b1_ref[...], 0.0)          # b1 is (20, 1), splats over lanes
    # fc2 (output width 1): VPU multiply + sublane reduce instead of a second
    # MXU push/pop; result (1, TB) stays lane-dense for an unmasked store.
    y = jnp.sum(h * w2c_ref[...], axis=0, keepdims=True) + b2_ref[...]
    ot_ref[...] = y.astype(ot_ref.dtype)


def zeheng_forward(x, w1, b1, w2, b2, *, tb=None):
    """Forward pass of Zeheng.

    x:  (B, 10) float32
    w1: (20, 10), b1: (20,)    -- PyTorch fc1 parameters
    w2: (1, 20),  b2: (1,)     -- PyTorch fc2 parameters
    returns (B, 1) float32
    """
    B, in_f = x.shape
    hid = w1.shape[0]
    out_f = w2.shape[0]          # == 1 for this module

    # Batch tile on the lane axis: multiple of 128, capped so the per-step
    # VMEM footprint (x tile + h intermediate + double buffering) stays far
    # below the scoped default on every chip (incl. v7x's 64 MiB physical).
    if tb is None:
        tb = min(2048, _round_up(B, 128))
    tb = _round_up(tb, 128)
    b_pad = _round_up(B, tb)

    # Transpose so batch is the lane (fast) axis; zero-pad ragged last tile.
    xt = x.T                                        # (10, B)
    if b_pad != B:
        xt = jnp.pad(xt, ((0, 0), (0, b_pad - B)))

    b1c = b1.reshape(hid, 1)                        # (20, 1)
    w2c = w2.reshape(hid, 1)                        # (20, 1) column of fc2 weights
    b2c = b2.reshape(out_f, 1)                      # (1, 1)

    grid = (b_pad // tb,)
    yt = pl.pallas_call(
        _mlp_kernel,
        out_shape=jax.ShapeDtypeStruct((out_f, b_pad), jnp.float32),
        grid=grid,
        in_specs=[
            pl.BlockSpec((in_f, tb), lambda i: (0, i)),     # streamed x tiles
            pl.BlockSpec((hid, in_f), lambda i: (0, 0)),    # VMEM-resident weights
            pl.BlockSpec((hid, 1), lambda i: (0, 0)),
            pl.BlockSpec((hid, 1), lambda i: (0, 0)),
            pl.BlockSpec((out_f, 1), lambda i: (0, 0)),
        ],
        out_specs=pl.BlockSpec((out_f, tb), lambda i: (0, i)),
        compiler_params=pltpu.CompilerParams(
            dimension_semantics=("parallel",),   # v7x: shard batch tiles across both TCs
        ),
    )(xt, w1, b1c, w2c, b2c)

    return yt[:, :B].T                              # (B, 1)


if __name__ == "__main__":
    key = jax.random.PRNGKey(0)
    k_x, k1, k2, k3, k4 = jax.random.split(key, 5)

    # PyTorch nn.Linear default init: U(-1/sqrt(fan_in), +1/sqrt(fan_in)).
    bound1 = 1.0 / jnp.sqrt(10.0)
    bound2 = 1.0 / jnp.sqrt(20.0)
    w1 = jax.random.uniform(k1, (20, 10), jnp.float32, -bound1, bound1)
    b1 = jax.random.uniform(k2, (20,), jnp.float32, -bound1, bound1)
    w2 = jax.random.uniform(k3, (1, 20), jnp.float32, -bound2, bound2)
    b2 = jax.random.uniform(k4, (1,), jnp.float32, -bound2, bound2)

    def ref_fwd(x):
        return jnp.maximum(x @ w1.T + b1, 0.0) @ w2.T + b2

    # Small batch (single padded tile).
    x_small = jax.random.normal(k_x, (8, 10), jnp.float32)
    out_small = jax.block_until_ready(zeheng_forward(x_small, w1, b1, w2, b2))
    assert out_small.shape == (8, 1)
    assert jnp.allclose(out_small, ref_fwd(x_small), atol=1e-5), "mismatch (small)"

    # Multi-tile batch with a ragged last tile (exercises grid + padding path).
    x_big = jax.random.normal(k_x, (300, 10), jnp.float32)
    out_big = jax.block_until_ready(zeheng_forward(x_big, w1, b1, w2, b2, tb=128))
    assert out_big.shape == (300, 1)
    assert jnp.allclose(out_big, ref_fwd(x_big), atol=1e-5), "mismatch (tiled)"

    print("KERNEL_OK")
</pallas_src>

<mosaic_0001>
module attributes {stable_mosaic.version = 11 : i64} {
  func.func @_mlp_kernel(%arg0: i32, %arg1: memref<10x128xf32, #tpu.memory_space<vmem>>, %arg2: memref<20x10xf32, #tpu.memory_space<vmem>>, %arg3: memref<20x1xf32, #tpu.memory_space<vmem>>, %arg4: memref<20x1xf32, #tpu.memory_space<vmem>>, %arg5: memref<1x1xf32, #tpu.memory_space<vmem>>, %arg6: memref<1x128xf32, #tpu.memory_space<vmem>>) attributes {dimension_semantics = [#tpu.dimension_semantics<parallel>], iteration_bounds = array<i64: 1>, scalar_prefetch = 0 : i64, scratch_operands = 0 : i64, tpu.core_type = #tpu.core_type<tc>, window_params = [{transform_indices = @transform_0, window_bounds = array<i64: 10, 128>}, {pipeline_mode = #tpu.pipeline_mode<synchronous>, transform_indices = @transform_1, window_bounds = array<i64: 20, 10>}, {pipeline_mode = #tpu.pipeline_mode<synchronous>, transform_indices = @transform_2, window_bounds = array<i64: 20, 1>}, {pipeline_mode = #tpu.pipeline_mode<synchronous>, transform_indices = @transform_3, window_bounds = array<i64: 20, 1>}, {pipeline_mode = #tpu.pipeline_mode<synchronous>, transform_indices = @transform_4, window_bounds = array<i64: 1, 1>}, {transform_indices = @transform_5, window_bounds = array<i64: 1, 128>}]} {
    %c0 = arith.constant 0 : index
    %c0_0 = arith.constant 0 : index
    %0 = vector.load %arg2[%c0, %c0_0] : memref<20x10xf32, #tpu.memory_space<vmem>>, vector<20x10xf32>
    %c0_1 = arith.constant 0 : index
    %c0_2 = arith.constant 0 : index
    %1 = vector.load %arg1[%c0_1, %c0_2] : memref<10x128xf32, #tpu.memory_space<vmem>>, vector<10x128xf32>
    %cst = arith.constant dense<0.000000e+00> : vector<20x128xf32>
    %2 = tpu.matmul %0, %1, %cst {dimension_numbers = #tpu.dot_dimension_numbers<[1], [0], [0], [1], [0, 0, 1, 1], [], []>} : vector<20x10xf32>, vector<10x128xf32>, vector<20x128xf32> -> vector<20x128xf32>
    %c0_3 = arith.constant 0 : index
    %c0_4 = arith.constant 0 : index
    %3 = vector.load %arg3[%c0_3, %c0_4] : memref<20x1xf32, #tpu.memory_space<vmem>>, vector<20x1xf32>
    %4 = vector.broadcast %3 : vector<20x1xf32> to vector<20x128xf32>
    %5 = arith.addf %2, %4 : vector<20x128xf32>
    %cst_5 = arith.constant 0.000000e+00 : f32
    %6 = vector.broadcast %cst_5 : f32 to vector<20x128xf32>
    %7 = arith.maximumf %5, %6 : vector<20x128xf32>
    %c0_6 = arith.constant 0 : index
    %c0_7 = arith.constant 0 : index
    %8 = vector.load %arg4[%c0_6, %c0_7] : memref<20x1xf32, #tpu.memory_space<vmem>>, vector<20x1xf32>
    %9 = vector.broadcast %8 : vector<20x1xf32> to vector<20x128xf32>
    %10 = arith.mulf %7, %9 : vector<20x128xf32>
    %cst_8 = arith.constant dense<0.000000e+00> : vector<128xf32>
    %11 = vector.multi_reduction <add>, %10, %cst_8 [0] : vector<20x128xf32> to vector<128xf32>
    %12 = vector.shape_cast %11 : vector<128xf32> to vector<1x128xf32>
    %c0_9 = arith.constant 0 : index
    %c0_10 = arith.constant 0 : index
    %13 = vector.load %arg5[%c0_9, %c0_10] : memref<1x1xf32, #tpu.memory_space<vmem>>, vector<1x1xf32>
    %14 = vector.broadcast %13 : vector<1x1xf32> to vector<1x128xf32>
    %15 = arith.addf %12, %14 : vector<1x128xf32>
    %c0_11 = arith.constant 0 : index
    %c0_12 = arith.constant 0 : index
    %16 = vector.load %arg6[%c0_11, %c0_12] : memref<1x128xf32, #tpu.memory_space<vmem>>, vector<1x128xf32>
    tpu.vector_store %arg6[%c0_11, %c0_12], %15 {strides = array<i32>} : memref<1x128xf32, #tpu.memory_space<vmem>>, vector<1x128xf32>,
    return
  }
  func.func @transform_0(%arg0: i32) -> (i32, i32) {
    %c0_i32 = arith.constant 0 : i32
    %c0_i32_0 = arith.constant 0 : i32
    return %c0_i32, %arg0 : i32, i32
  }
  func.func @transform_1(%arg0: i32) -> (i32, i32) {
    %c0_i32 = arith.constant 0 : i32
    %c0_i32_0 = arith.constant 0 : i32
    %c0_i32_1 = arith.constant 0 : i32
    return %c0_i32, %c0_i32_0 : i32, i32
  }
  func.func @transform_2(%arg0: i32) -> (i32, i32) {
    %c0_i32 = arith.constant 0 : i32
    %c0_i32_0 = arith.constant 0 : i32
    %c0_i32_1 = arith.constant 0 : i32
    return %c0_i32, %c0_i32_0 : i32, i32
  }
  func.func @transform_3(%arg0: i32) -> (i32, i32) {
    %c0_i32 = arith.constant 0 : i32
    %c0_i32_0 = arith.constant 0 : i32
    %c0_i32_1 = arith.constant 0 : i32
    return %c0_i32, %c0_i32_0 : i32, i32
  }
  func.func @transform_4(%arg0: i32) -> (i32, i32) {
    %c0_i32 = arith.constant 0 : i32
    %c0_i32_0 = arith.constant 0 : i32
    %c0_i32_1 = arith.constant 0 : i32
    return %c0_i32, %c0_i32_0 : i32, i32
  }
  func.func @transform_5(%arg0: i32) -> (i32, i32) {
    %c0_i32 = arith.constant 0 : i32
    %c0_i32_0 = arith.constant 0 : i32
    return %c0_i32, %arg0 : i32, i32
  }
}

</mosaic_0001>

<bundles_post_ra>
// kernel: tpu_custom_call.1
= control target key start
LH: loop header
LB: loop body
LE: loop exit
PB: predicated region body
PF: predicated region fallthrough
CT: control target
= control target key end

     0   :  { %s330_s0 = inlined_call_operand.vmem [shape: f32[10,128], index: 0, kind: input, shape index: {}]   ;;  %s331_s1 = inlined_call_operand.vmem [shape: f32[20,10], index: 1, kind: input, shape index: {}]   ;;  %s332_s2 = inlined_call_operand.vmem [shape: f32[20,1], index: 2, kind: input, shape index: {}]   ;;  %s333_s3 = inlined_call_operand.vmem [shape: f32[20,1], index: 3, kind: input, shape index: {}]   ;;  %s334_s4 = inlined_call_operand.<no memory space> [shape: f32[1,1], index: 4, kind: input, shape index: {}]   ;;  %s335_s5 = inlined_call_operand.hbm [shape: f32[1,128], index: 5, kind: output, shape index: {}]  }
   0x1   :  { %v10_v0 = vstv %s334_s4 }
   0x2   :  { %11 = vst [vmem:[#allocation2] sm:$0x1] %v10_v0 }
   0x3   :  { %v27_v1 = vld [vmem:[%s330_s0 + $0x8] sm:$0x3]  ;;  %vm56_vm0 = vcmask 1041408   ;;  %v254_v2 = vmov 0.0   ;;  %v26_v3 = vld [vmem:[%s330_s0] sm:$0xff]  ;;  %vm46_vm1 = vcmask 80896  }
   0x4   :  { %209 = vmatprep.subr.mxu0 %v254_v2  ;;  %222 = vmatprep.subr.mxu1 %v254_v2  ;;  %v23_v4 = vld [vmem:[%s331_s1] sm:$0xff]  ;;  %v24_v5 = vld [vmem:[%s331_s1 + $0x8] sm:$0xff] }
   0x5   :  { %210 = vmatpush3.msk.msra.mxu0 %vm56_vm0, %v27_v1  ;;  %224 = vmatpush3.msk.msra.mxu1 %vm56_vm0, %v27_v1 }
   0x6   :  { %211 = vmatprep.subr.mxu0 %v254_v2  ;;  %223 = vmatprep.subr.mxu1 %v254_v2 }
   0x7   :  { %212 = vmatpush3.msra.mxu0 %v26_v3  ;;  %225 = vmatpush3.msra.mxu1 %v26_v3 }
   0x8   :  { %12 = vsyncpa [#allocation4], 0  ;;  %vm255_vm2 = vmmov 0   ;;  %v28_v6 = vld [vmem:[%s332_s2] sm:$0xff]  ;;  %v30_v7 = vld [vmem:[%s332_s2 + $0x10] sm:$0xf]  ;;  %v180_v38 = vlaneseq }
   0x9   :  { %213 = vmatprep.mubr.msk.f32.mxu0 %vm255_vm2, %v254_v2  ;;  %216 = vmatprep.mubr.msk.f32.mxu1 %vm255_vm2, %v254_v2  ;;  %v25_v8 = vld [vmem:[%s331_s1 + $0x10] sm:$0xf]  ;;  %v256_v9 = vmov 0   ;;  %v29_v10 = vld [vmem:[%s332_s2 + $0x8] sm:$0xff]  ;;  %v143_v11 = vld [vmem:[%s333_s3] sm:$0xff]  ;;  %vm165_vm3 = vcmask 1043456  }
   0xa   :  { %214 = vmatmul.mubr.msk.f32.vlgmr.msra.gmra.mxu0 %vm46_vm1, %v23_v4  ;;  %217 = vmatmul.mubr.msk.f32.vlgmr.msra.gmra.mxu1 %vm46_vm1, %v24_v5  ;;  %v144_v12 = vld [vmem:[%s333_s3 + $0x8] sm:$0xff]  ;;  %v145_v13 = vld [vmem:[%s333_s3 + $0x10] sm:$0xf]  ;;  %v174_v14 = vld [vmem:[#allocation2] sm:$0x1]  ;;  %v181_v41 = vshrl.u32 %v180_v38, 7 }
   0xb   :  { %219 = vmatprep.mubr.msk.f32.mxu1 %vm255_vm2, %v254_v2  ;;  %230 = vset.pattern.permute.xlu0 %v256_v9  ;;  %s257_s2 = smov [#allocation3]  }
   0xc   :  { %33 = vperm.xlu0 %230, %v28_v6   ;;  %231 = vset.pattern.permute.xlu1 %v256_v9  ;;  %v182_v44 = vsub.s32 0, %v181_v41  ;;  %s192_s3 = sshll.u32 %s257_s2, 4  ;;  %s193_s3 = int_to_ptr.vmem [resolvable:$true] %s192_s3 }
   0xd   :  { %43 = vperm.xlu1 %231, %v30_v7   ;;  %s232_s14 = scalar_lea.vmem %s193_s3, 16  ;;  %s236_s15 = scalar_lea.vmem %s193_s3, 32 }
   0xe   :  { %220 = vmatmul.mubr.msk.f32.gmra.mxu1 %vm46_vm1, %v25_v8  ;;  %p233_p0 = scmp.ne.s32.totalorder %s193_s3, %s232_s14  ;;  %p237_p1 = scmp.lt.s32.totalorder %s193_s3, %s193_s3 }
   0xf   :  { %p238_p2 = scmp.lt.s32.totalorder %s236_s15, %s232_s14 }
  0x10   :  { %38 = vperm.xlu0 %230, %v29_v10  }
  0x11   :  { %148 = vperm.xlu1 %231, %v143_v11   ;;  %p239_p3 = por %p238_p2, %p237_p1 }
  0x13   :  { %p240_p4 = pnand %p239_p3, %p233_p0 }
  0x14   :  { %153 = vperm.xlu0 %230, %v144_v12  }
  0x15   :  { %158 = vperm.xlu1 %231, %v145_v13  }
  0x18   :  { %177 = vperm.xlu0 %230, %v174_v14  }
  0x87   :  { %v34_v15 = vpop.permute.xlu0 %33 }
  0x88   :  { %v44_v16 = vpop.permute.xlu1 %43 }
  0x8b   :  { %v39_v17 = vpop.permute.xlu0 %38 }
  0x8c   :  { %v149_v20 = vpop.permute.xlu1 %148 }
  0x8f   :  { %v154_v28 = vpop.permute.xlu0 %153 }
  0x90   :  { %v159_v34 = vpop.permute.xlu1 %158 }
  0x93   :  { %v178_v46 = vpop.permute.xlu0 %177 }
  0x94   :  { %v183_v48 = vrot.slane %v178_v46, %v182_v44 }
  0xca   :  { %v126_v18 = vpop.f32.mrf.mxu0  ;;  %v131_v19 = vpop.f32.mrf.mxu1 }
  0xcb   :  { %v127_v21 = vadd.f32 %v126_v18, %v34_v15  ;;  %v132_v22 = vadd.f32 %v131_v19, %v39_v17 }
  0xcc   :  { %v218_v23 = vpop.f32.mrf.mxu1  ;;  %v215_v24 = vpop.f32.mrf.mxu0 }
  0xcd   :  { %v140_v25 = vmax.f32 %v127_v21, 0.0  ;;  %v141_v26 = vmax.f32 %v132_v22, 0.0 }
  0xce   :  { %v136_v27 = vpop.f32.mrf.mxu1 }
  0xcf   :  { %v137_v29 = vadd.f32 %v136_v27, %v44_v16  ;;  %v161_v30 = vmul.f32 %v149_v20, %v140_v25  ;;  %v162_v31 = vmul.f32 %v154_v28, %v141_v26 }
  0xd0   :  { %v221_v32 = vpop.f32.mrf.mxu1 }
  0xd1   :  { %v142_v33 = vmax.f32 %v137_v29, 0.0  ;;  %v164_v36 = vadd.f32 %v162_v31, %v161_v30 }
  0xd3   :  { %v163_v35 = vmul.f32 %v159_v34, %v142_v33 }
  0xd5   :  { %v166_v37 = vsel %vm165_vm3, %v163_v35, 0.0 }
  0xd6   :  { %v167_v39 = vadd.f32 %v166_v37, %v164_v36 }
  0xd8   :  { %v168_v40 = vrot.slane %v167_v39, 4 }
  0xda   :  { %v169_v42 = vadd.f32 %v168_v40, %v167_v39 }
  0xdc   :  { %v170_v43 = vrot.slane %v169_v42, 2 }
  0xde   :  { %v171_v45 = vadd.f32 %v170_v43, %v169_v42 }
  0xe0   :  { %v172_v47 = vrot.slane %v171_v45, 1 }
  0xe2   :  { %v173_v49 = vadd.f32 %v172_v47, %v171_v45 }
  0xe4   :  { %v184_v50 = vadd.f32 %v183_v48, %v173_v49 }
  0xe6   :  { %185 = vst [vmem:[#allocation3] sm:$0x1] %v184_v50 }
  0xe7   :  { %243 = shalt.err (!%p240_p4)
}
  0xe8   :  { %195 = dma.vmem_to_hbm [thread:$0]  %s193_s3, 16, %s335_s5, [#allocation4]  }
  0xe9   :  { %252 = dma.done.wait [#allocation4], 16  }
  0xea   :  { %253 = vsyncadd [#allocation4], 4294967280 }
  0xeb   :  { %199 = vsyncpa [#allocation4], 1 }

</bundles_post_ra>
